<compile_context>
chip_gen: v6e
topology: v6e:2x2x1
jax: 0.10.0
libtpu: 0.0.40
codegen_flags: <defaults>
</compile_context>

<pallas_src>
import jax
import jax.numpy as jnp
from jax.experimental import pallas as pl
from jax.experimental.pallas import tpu as pltpu

_LN_EPS = 1e-5
_TM_MAX = 4096               # token tile upper bound (fits easily in VMEM, even v7x)
_INV_SQRT2 = 0.7071067811865476


def _erf(z):
    # Abramowitz & Stegun 7.1.26: |erf(z) - approx| <= 1.5e-7.
    # Leans on EUP (exp, divide) instead of a long pure-VALU polynomial.
    a = jnp.abs(z)
    t = 1.0 / (1.0 + 0.3275911 * a)
    poly = t * (0.254829592 + t * (-0.284496736 + t * (1.421413741
             + t * (-1.453152027 + t * 1.061405429))))
    e = 1.0 - poly * jnp.exp(-(a * a))
    return jnp.where(z < 0.0, -e, e)


def _gelu_exact(x):
    # PyTorch nn.GELU() default: 0.5 * x * (1 + erf(x / sqrt(2))).
    return 0.5 * x * (1.0 + _erf(x * _INV_SQRT2))


def _noise_processor_kernel(x_ref, w1_ref, b1_ref, w2_ref, b2_ref,
                            gamma_ref, beta_ref, o_ref):
    # x_ref: (TM, D) natural token-major tile.  Contract over x's last dim so
    # the result comes out tokens-on-lanes: (H, TM).  No forced upcasts: bf16
    # operands hit the MXU natively, accumulation stays f32.
    h = jax.lax.dot_general(
        w1_ref[...], x_ref[...],
        dimension_numbers=(((1,), (1,)), ((), ())),
        preferred_element_type=jnp.float32)                          # (H, TM)
    h = _gelu_exact(h + b1_ref[...])                                 # (H,1) lane-broadcast

    # mlp[2]: Linear(hidden_dim -> noise_dim): W2 @ h  -> (D, TM), f32.
    y = jnp.dot(w2_ref[...], h, preferred_element_type=jnp.float32)
    y = y + b2_ref[...]

    # LayerNorm over the feature axis (axis 0 in this layout): sublane (XLU)
    # reduction, biased variance, eps = 1e-5, affine -- PyTorch defaults.
    mean = jnp.mean(y, axis=0, keepdims=True)                        # (1, TM)
    c = y - mean
    var = jnp.mean(c * c, axis=0, keepdims=True)
    out = c * jax.lax.rsqrt(var + _LN_EPS) * gamma_ref[...] + beta_ref[...]

    # Single in-VMEM transpose (XLU) so the HBM output keeps the natural (M, D)
    # layout; no extra HBM round trip on the output side.
    o_ref[...] = out.T.astype(o_ref.dtype)


def _round_up(x, m):
    return (x + m - 1) // m * m


def _choose_tm(m):
    # Big tiles amortize the ~0.35us per-grid-step overhead; clamp so the
    # "parallel" grid axis keeps >= 2 steps when the input is big enough
    # (feeds both v7x TensorCores) and stays a multiple of 128 so the
    # tokens-on-lanes compute is lane-dense.
    if m <= 256:
        return max(_round_up(m, 8), 8)       # single exact tile for tiny inputs
    return min(_TM_MAX, _round_up(pl.cdiv(m, 2), 128))


@jax.jit
def noise_processor(noise, w1, b1, w2, b2, gamma, beta):
    """noise: (B, S, D). Weights in PyTorch Linear convention: W (out, in), b (out,)."""
    B, S, D = noise.shape
    H = b1.shape[0]
    M = B * S
    TM = _choose_tm(M)
    n_tiles = pl.cdiv(M, TM)   # ragged last tile handled by Pallas (OOB writes dropped;
                               # padded lanes are per-token garbage, never read back)

    x2d = noise.reshape(M, D)  # free (contiguous); no pad, no transpose, no extra HBM pass

    # Matmul operands in the activation dtype (native bf16 MXU path when the
    # noise is bf16); biases / LayerNorm params stay f32 (the math is f32).
    w1 = w1.astype(noise.dtype)
    w2 = w2.astype(noise.dtype)
    b1_c = b1.astype(jnp.float32).reshape(H, 1)
    b2_c = b2.astype(jnp.float32).reshape(D, 1)
    g_c = gamma.astype(jnp.float32).reshape(D, 1)
    be_c = beta.astype(jnp.float32).reshape(D, 1)

    cost = pl.CostEstimate(
        flops=4 * M * D * H + 12 * M * D,
        transcendentals=M * H,
        bytes_accessed=noise.dtype.itemsize * 2 * M * D + 4 * (2 * D * H + H + 3 * D),
    )

    out2d = pl.pallas_call(
        _noise_processor_kernel,
        out_shape=jax.ShapeDtypeStruct((M, D), noise.dtype),
        grid=(n_tiles,),
        in_specs=[
            pl.BlockSpec((TM, D), lambda i: (i, 0)),   # activation tile, natural layout
            pl.BlockSpec((H, D), lambda i: (0, 0)),    # W1 (VMEM-resident across steps)
            pl.BlockSpec((H, 1), lambda i: (0, 0)),    # b1
            pl.BlockSpec((D, H), lambda i: (0, 0)),    # W2
            pl.BlockSpec((D, 1), lambda i: (0, 0)),    # b2
            pl.BlockSpec((D, 1), lambda i: (0, 0)),    # LayerNorm gamma
            pl.BlockSpec((D, 1), lambda i: (0, 0)),    # LayerNorm beta
        ],
        out_specs=pl.BlockSpec((TM, D), lambda i: (i, 0)),
        compiler_params=pltpu.CompilerParams(
            dimension_semantics=("parallel",)),        # megacore-shard token tiles (v7x)
        cost_estimate=cost,
    )(x2d, w1, b1_c, w2, b2_c, g_c, be_c)

    return out2d.reshape(B, S, D)                      # free (contiguous)


def _reference(noise, w1, b1, w2, b2, gamma, beta):
    h = jnp.einsum("bsd,hd->bsh", noise, w1) + b1
    h = jax.nn.gelu(h, approximate=False)              # exact erf == nn.GELU() default
    y = jnp.einsum("bsh,dh->bsd", h, w2) + b2
    mean = jnp.mean(y, axis=-1, keepdims=True)
    var = jnp.mean((y - mean) ** 2, axis=-1, keepdims=True)
    return (y - mean) / jnp.sqrt(var + _LN_EPS) * gamma + beta


if __name__ == "__main__":
    # Small shapes consistent with the module: noise_dim=32, hidden_dim=64 (=2*noise_dim).
    B, S, D = 2, 8, 32
    H = 2 * D

    key = jax.random.PRNGKey(0)
    k_noise, k_w1, k_b1, k_w2, k_b2 = jax.random.split(key, 5)

    noise = jax.random.normal(k_noise, (B, S, D), dtype=jnp.float32)

    # Deterministic synthetic params (PyTorch Linear shapes: W (out, in), b (out,)).
    w1 = jax.random.normal(k_w1, (H, D), dtype=jnp.float32) * 0.05
    b1 = jax.random.normal(k_b1, (H,), dtype=jnp.float32) * 0.01
    w2 = jax.random.normal(k_w2, (D, H), dtype=jnp.float32) * 0.05
    b2 = jax.random.normal(k_b2, (D,), dtype=jnp.float32) * 0.01
    gamma = jnp.ones((D,), dtype=jnp.float32)   # nn.LayerNorm default weight
    beta = jnp.zeros((D,), dtype=jnp.float32)   # nn.LayerNorm default bias

    out = noise_processor(noise, w1, b1, w2, b2, gamma, beta)
    out = jax.block_until_ready(out)

    ref = _reference(noise, w1, b1, w2, b2, gamma, beta)
    assert out.shape == (B, S, D)
    assert jnp.allclose(out, ref, atol=1e-5, rtol=1e-5), "mismatch vs JAX reference"

    print("KERNEL_OK")
</pallas_src>

<mosaic_0001>
module attributes {stable_mosaic.version = 11 : i64} {
  func.func @_noise_processor_kernel(%arg0: i32, %arg1: memref<16x32xf32, #tpu.memory_space<vmem>>, %arg2: memref<64x32xf32, #tpu.memory_space<vmem>>, %arg3: memref<64x1xf32, #tpu.memory_space<vmem>>, %arg4: memref<32x64xf32, #tpu.memory_space<vmem>>, %arg5: memref<32x1xf32, #tpu.memory_space<vmem>>, %arg6: memref<32x1xf32, #tpu.memory_space<vmem>>, %arg7: memref<32x1xf32, #tpu.memory_space<vmem>>, %arg8: memref<16x32xf32, #tpu.memory_space<vmem>>) attributes {dimension_semantics = [#tpu.dimension_semantics<parallel>], iteration_bounds = array<i64: 1>, scalar_prefetch = 0 : i64, scratch_operands = 0 : i64, tpu.core_type = #tpu.core_type<tc>, window_params = [{transform_indices = @transform_0, window_bounds = array<i64: 16, 32>}, {pipeline_mode = #tpu.pipeline_mode<synchronous>, transform_indices = @transform_1, window_bounds = array<i64: 64, 32>}, {pipeline_mode = #tpu.pipeline_mode<synchronous>, transform_indices = @transform_2, window_bounds = array<i64: 64, 1>}, {pipeline_mode = #tpu.pipeline_mode<synchronous>, transform_indices = @transform_3, window_bounds = array<i64: 32, 64>}, {pipeline_mode = #tpu.pipeline_mode<synchronous>, transform_indices = @transform_4, window_bounds = array<i64: 32, 1>}, {pipeline_mode = #tpu.pipeline_mode<synchronous>, transform_indices = @transform_5, window_bounds = array<i64: 32, 1>}, {pipeline_mode = #tpu.pipeline_mode<synchronous>, transform_indices = @transform_6, window_bounds = array<i64: 32, 1>}, {transform_indices = @transform_7, window_bounds = array<i64: 16, 32>}]} {
    %c0 = arith.constant 0 : index
    %c0_0 = arith.constant 0 : index
    %0 = vector.load %arg2[%c0, %c0_0] : memref<64x32xf32, #tpu.memory_space<vmem>>, vector<64x32xf32>
    %c0_1 = arith.constant 0 : index
    %c0_2 = arith.constant 0 : index
    %1 = vector.load %arg1[%c0_1, %c0_2] : memref<16x32xf32, #tpu.memory_space<vmem>>, vector<16x32xf32>
    %cst = arith.constant dense<0.000000e+00> : vector<64x16xf32>
    %2 = tpu.matmul %0, %1, %cst {dimension_numbers = #tpu.dot_dimension_numbers<[1], [1], [0], [0], [0, 0, 1, 0], [], []>} : vector<64x32xf32>, vector<16x32xf32>, vector<64x16xf32> -> vector<64x16xf32>
    %c0_3 = arith.constant 0 : index
    %c0_4 = arith.constant 0 : index
    %3 = vector.load %arg3[%c0_3, %c0_4] : memref<64x1xf32, #tpu.memory_space<vmem>>, vector<64x1xf32>
    %4 = vector.broadcast %3 : vector<64x1xf32> to vector<64x16xf32>
    %5 = arith.addf %2, %4 : vector<64x16xf32>
    %cst_5 = arith.constant 5.000000e-01 : f32
    %6 = vector.broadcast %cst_5 : f32 to vector<64x16xf32>
    %7 = arith.mulf %6, %5 : vector<64x16xf32>
    %cst_6 = arith.constant 0.707106769 : f32
    %8 = vector.broadcast %cst_6 : f32 to vector<64x16xf32>
    %9 = arith.mulf %5, %8 : vector<64x16xf32>
    %10 = math.absf %9 : vector<64x16xf32>
    %cst_7 = arith.constant 0.327591091 : f32
    %11 = vector.broadcast %cst_7 : f32 to vector<64x16xf32>
    %12 = arith.mulf %11, %10 : vector<64x16xf32>
    %cst_8 = arith.constant 1.000000e+00 : f32
    %13 = vector.broadcast %cst_8 : f32 to vector<64x16xf32>
    %14 = arith.addf %13, %12 : vector<64x16xf32>
    %cst_9 = arith.constant 1.000000e+00 : f32
    %15 = vector.broadcast %cst_9 : f32 to vector<64x16xf32>
    %16 = arith.divf %15, %14 : vector<64x16xf32>
    %cst_10 = arith.constant 1.06140542 : f32
    %17 = vector.broadcast %cst_10 : f32 to vector<64x16xf32>
    %18 = arith.mulf %16, %17 : vector<64x16xf32>
    %cst_11 = arith.constant -1.45315206 : f32
    %19 = vector.broadcast %cst_11 : f32 to vector<64x16xf32>
    %20 = arith.addf %19, %18 : vector<64x16xf32>
    %21 = arith.mulf %16, %20 : vector<64x16xf32>
    %cst_12 = arith.constant 1.42141378 : f32
    %22 = vector.broadcast %cst_12 : f32 to vector<64x16xf32>
    %23 = arith.addf %22, %21 : vector<64x16xf32>
    %24 = arith.mulf %16, %23 : vector<64x16xf32>
    %cst_13 = arith.constant -0.284496725 : f32
    %25 = vector.broadcast %cst_13 : f32 to vector<64x16xf32>
    %26 = arith.addf %25, %24 : vector<64x16xf32>
    %27 = arith.mulf %16, %26 : vector<64x16xf32>
    %cst_14 = arith.constant 0.254829586 : f32
    %28 = vector.broadcast %cst_14 : f32 to vector<64x16xf32>
    %29 = arith.addf %28, %27 : vector<64x16xf32>
    %30 = arith.mulf %16, %29 : vector<64x16xf32>
    %31 = arith.mulf %10, %10 : vector<64x16xf32>
    %cst_15 = arith.constant 0.000000e+00 : f32
    %32 = vector.broadcast %cst_15 : f32 to vector<64x16xf32>
    %33 = arith.subf %32, %31 : vector<64x16xf32>
    %34 = math.exp %33 : vector<64x16xf32>
    %35 = arith.mulf %30, %34 : vector<64x16xf32>
    %cst_16 = arith.constant 1.000000e+00 : f32
    %36 = vector.broadcast %cst_16 : f32 to vector<64x16xf32>
    %37 = arith.subf %36, %35 : vector<64x16xf32>
    %cst_17 = arith.constant 0.000000e+00 : f32
    %38 = vector.broadcast %cst_17 : f32 to vector<64x16xf32>
    %39 = arith.cmpf olt, %9, %38 : vector<64x16xf32>
    %cst_18 = arith.constant 0.000000e+00 : f32
    %40 = vector.broadcast %cst_18 : f32 to vector<64x16xf32>
    %41 = arith.subf %40, %37 : vector<64x16xf32>
    %42 = arith.select %39, %41, %37 : vector<64x16xi1>, vector<64x16xf32>
    %cst_19 = arith.constant 1.000000e+00 : f32
    %43 = vector.broadcast %cst_19 : f32 to vector<64x16xf32>
    %44 = arith.addf %43, %42 : vector<64x16xf32>
    %45 = arith.mulf %7, %44 : vector<64x16xf32>
    %c0_20 = arith.constant 0 : index
    %c0_21 = arith.constant 0 : index
    %46 = vector.load %arg4[%c0_20, %c0_21] : memref<32x64xf32, #tpu.memory_space<vmem>>, vector<32x64xf32>
    %cst_22 = arith.constant dense<0.000000e+00> : vector<32x16xf32>
    %47 = tpu.matmul %46, %45, %cst_22 {dimension_numbers = #tpu.dot_dimension_numbers<[1], [0], [0], [1], [0, 0, 1, 1], [], []>} : vector<32x64xf32>, vector<64x16xf32>, vector<32x16xf32> -> vector<32x16xf32>
    %c0_23 = arith.constant 0 : index
    %c0_24 = arith.constant 0 : index
    %48 = vector.load %arg5[%c0_23, %c0_24] : memref<32x1xf32, #tpu.memory_space<vmem>>, vector<32x1xf32>
    %49 = vector.broadcast %48 : vector<32x1xf32> to vector<32x16xf32>
    %50 = arith.addf %47, %49 : vector<32x16xf32>
    %cst_25 = arith.constant dense<0.000000e+00> : vector<16xf32>
    %51 = vector.multi_reduction <add>, %50, %cst_25 [0] : vector<32x16xf32> to vector<16xf32>
    %52 = vector.shape_cast %51 : vector<16xf32> to vector<1x16xf32>
    %cst_26 = arith.constant 3.200000e+01 : f32
    %53 = vector.broadcast %cst_26 : f32 to vector<1x16xf32>
    %54 = arith.divf %52, %53 : vector<1x16xf32>
    %55 = vector.broadcast %54 : vector<1x16xf32> to vector<32x16xf32>
    %56 = arith.subf %50, %55 : vector<32x16xf32>
    %57 = arith.mulf %56, %56 : vector<32x16xf32>
    %cst_27 = arith.constant dense<0.000000e+00> : vector<16xf32>
    %58 = vector.multi_reduction <add>, %57, %cst_27 [0] : vector<32x16xf32> to vector<16xf32>
    %59 = vector.shape_cast %58 : vector<16xf32> to vector<1x16xf32>
    %cst_28 = arith.constant 3.200000e+01 : f32
    %60 = vector.broadcast %cst_28 : f32 to vector<1x16xf32>
    %61 = arith.divf %59, %60 : vector<1x16xf32>
    %cst_29 = arith.constant 9.99999974E-6 : f32
    %62 = vector.broadcast %cst_29 : f32 to vector<1x16xf32>
    %63 = arith.addf %61, %62 : vector<1x16xf32>
    %64 = math.rsqrt %63 : vector<1x16xf32>
    %65 = vector.broadcast %64 : vector<1x16xf32> to vector<32x16xf32>
    %66 = arith.mulf %56, %65 : vector<32x16xf32>
    %c0_30 = arith.constant 0 : index
    %c0_31 = arith.constant 0 : index
    %67 = vector.load %arg6[%c0_30, %c0_31] : memref<32x1xf32, #tpu.memory_space<vmem>>, vector<32x1xf32>
    %68 = vector.broadcast %67 : vector<32x1xf32> to vector<32x16xf32>
    %69 = arith.mulf %66, %68 : vector<32x16xf32>
    %c0_32 = arith.constant 0 : index
    %c0_33 = arith.constant 0 : index
    %70 = vector.load %arg7[%c0_32, %c0_33] : memref<32x1xf32, #tpu.memory_space<vmem>>, vector<32x1xf32>
    %71 = vector.broadcast %70 : vector<32x1xf32> to vector<32x16xf32>
    %72 = arith.addf %69, %71 : vector<32x16xf32>
    %73 = tpu.transpose %72, [1, 0] : vector<32x16xf32> -> vector<16x32xf32>
    %c0_34 = arith.constant 0 : index
    %c0_35 = arith.constant 0 : index
    %74 = vector.load %arg8[%c0_34, %c0_35] : memref<16x32xf32, #tpu.memory_space<vmem>>, vector<16x32xf32>
    tpu.vector_store %arg8[%c0_34, %c0_35], %73 {strides = array<i32>} : memref<16x32xf32, #tpu.memory_space<vmem>>, vector<16x32xf32>,
    return
  }
  func.func @transform_0(%arg0: i32) -> (i32, i32) {
    %c0_i32 = arith.constant 0 : i32
    %c0_i32_0 = arith.constant 0 : i32
    return %arg0, %c0_i32 : i32, i32
  }
  func.func @transform_1(%arg0: i32) -> (i32, i32) {
    %c0_i32 = arith.constant 0 : i32
    %c0_i32_0 = arith.constant 0 : i32
    %c0_i32_1 = arith.constant 0 : i32
    return %c0_i32, %c0_i32_0 : i32, i32
  }
  func.func @transform_2(%arg0: i32) -> (i32, i32) {
    %c0_i32 = arith.constant 0 : i32
    %c0_i32_0 = arith.constant 0 : i32
    %c0_i32_1 = arith.constant 0 : i32
    return %c0_i32, %c0_i32_0 : i32, i32
  }
  func.func @transform_3(%arg0: i32) -> (i32, i32) {
    %c0_i32 = arith.constant 0 : i32
    %c0_i32_0 = arith.constant 0 : i32
    %c0_i32_1 = arith.constant 0 : i32
    return %c0_i32, %c0_i32_0 : i32, i32
  }
  func.func @transform_4(%arg0: i32) -> (i32, i32) {
    %c0_i32 = arith.constant 0 : i32
    %c0_i32_0 = arith.constant 0 : i32
    %c0_i32_1 = arith.constant 0 : i32
    return %c0_i32, %c0_i32_0 : i32, i32
  }
  func.func @transform_5(%arg0: i32) -> (i32, i32) {
    %c0_i32 = arith.constant 0 : i32
    %c0_i32_0 = arith.constant 0 : i32
    %c0_i32_1 = arith.constant 0 : i32
    return %c0_i32, %c0_i32_0 : i32, i32
  }
  func.func @transform_6(%arg0: i32) -> (i32, i32) {
    %c0_i32 = arith.constant 0 : i32
    %c0_i32_0 = arith.constant 0 : i32
    %c0_i32_1 = arith.constant 0 : i32
    return %c0_i32, %c0_i32_0 : i32, i32
  }
  func.func @transform_7(%arg0: i32) -> (i32, i32) {
    %c0_i32 = arith.constant 0 : i32
    %c0_i32_0 = arith.constant 0 : i32
    return %arg0, %c0_i32 : i32, i32
  }
}

</mosaic_0001>

<bundles_post_ra>
// kernel: noise_processor.1
= control target key start
LH: loop header
LB: loop body
LE: loop exit
PB: predicated region body
PF: predicated region fallthrough
CT: control target
= control target key end

     0   :  { %vm85_vm0 = vcmask 261120   ;;  %v850_v3 = vmov 0   ;;  %s1152_s0 = inlined_call_operand.vmem [shape: f32[16,32], index: 0, kind: input, shape index: {}]   ;;  %s1153_s1 = inlined_call_operand.vmem [shape: f32[64,32], index: 1, kind: input, shape index: {}]   ;;  %s1154_s2 = inlined_call_operand.vmem [shape: f32[64,1], index: 2, kind: input, shape index: {}]   ;;  %s1155_s3 = inlined_call_operand.vmem [shape: f32[32,64], index: 3, kind: input, shape index: {}]   ;;  %s1156_s4 = inlined_call_operand.vmem [shape: f32[32,1], index: 4, kind: input, shape index: {}]   ;;  %s1157_s5 = inlined_call_operand.vmem [shape: f32[32,1], index: 5, kind: input, shape index: {}]   ;;  %s1158_s6 = inlined_call_operand.vmem [shape: f32[32,1], index: 6, kind: input, shape index: {}]   ;;  %s1159_s7 = inlined_call_operand.hbm [shape: f32[16,32], index: 7, kind: output, shape index: {}]  }
   0x1   :  { %v36_v0 = vld [vmem:[%s1152_s0 + $0x8] sm:$0xff]  ;;  %v35_v1 = vld [vmem:[%s1152_s0] sm:$0xff]  ;;  %792 = vset.pattern.permute.xlu0 %v850_v3  ;;  %v44_v4 = vld [vmem:[%s1154_s2 + $0x38] sm:$0xff]  ;;  %793 = vset.pattern.permute.xlu1 %v850_v3 }
   0x2   :  { %v27_v2 = vld [vmem:[%s1153_s1] sm:$0xff]  ;;  %749 = vmatprep.subr.msk.mxu0 %vm85_vm0, %v36_v0  ;;  %82 = vperm.xlu0 %792, %v44_v4   ;;  %v42_v5 = vld [vmem:[%s1154_s2 + $0x28] sm:$0xff]  ;;  %v43_v6 = vld [vmem:[%s1154_s2 + $0x30] sm:$0xff] }
   0x3   :  { %753 = vmatprep.mubr.msk.f32.mxu0 %vm85_vm0, %v27_v2  ;;  %750 = vmatpush3.xpose.msk.msra.mxu0 %vm85_vm0, %v36_v0  ;;  %v28_v7 = vld [vmem:[%s1153_s1 + $0x8] sm:$0xff]  ;;  %v41_v8 = vld [vmem:[%s1154_s2 + $0x20] sm:$0xff]  ;;  %v29_v9 = vld [vmem:[%s1153_s1 + $0x10] sm:$0xff] }
   0x4   :  { %751 = vmatprep.subr.msk.mxu0 %vm85_vm0, %v35_v1  ;;  %72 = vperm.xlu1 %793, %v42_v5   ;;  %v40_v10 = vld [vmem:[%s1154_s2 + $0x18] sm:$0xff]  ;;  %v39_v12 = vld [vmem:[%s1154_s2 + $0x10] sm:$0xff] }
   0x5   :  { %v30_v11 = vld [vmem:[%s1153_s1 + $0x18] sm:$0xff] }
   0x6   :  { %77 = vperm.xlu0 %792, %v43_v6  }
   0x7   :  { %752 = vmatpush3.xpose.msk.msra.mxu0 %vm85_vm0, %v35_v1 }
   0x8   :  { %67 = vperm.xlu1 %793, %v41_v8  }
   0xa   :  { %754 = vmatmul.mubr.msk.f32.vlgmr.msra.gmra.mxu0 %vm85_vm0, %v28_v7 }
   0xb   :  { %756 = vmatprep.mubr.msk.f32.mxu0 %vm85_vm0, %v29_v9 }
   0xc   :  { %12 = vsyncpa [#allocation3], 0  ;;  %v31_v13 = vld [vmem:[%s1153_s1 + $0x20] sm:$0xff]  ;;  %62 = vperm.xlu0 %792, %v40_v10   ;;  %57 = vperm.xlu1 %793, %v39_v12   ;;  %v38_v14 = vld [vmem:[%s1154_s2 + $0x8] sm:$0xff]  ;;  %vm465_vm1 = vcmask 523264   ;;  %vm563_vm10 = vcmask 130048  }
   0xd   :  { %v32_v15 = vld [vmem:[%s1153_s1 + $0x28] sm:$0xff]  ;;  %v37_v16 = vld [vmem:[%s1154_s2] sm:$0xff]  ;;  %v33_v17 = vld [vmem:[%s1153_s1 + $0x30] sm:$0xff] }
   0xe   :  { %757 = vmatmul.mubr.msk.f32.gmra.mxu0 %vm85_vm0, %v30_v11  ;;  %v441_v18 = vld [vmem:[%s1156_s4] sm:$0xff]  ;;  %v34_v19 = vld [vmem:[%s1153_s1 + $0x38] sm:$0xff]  ;;  %v442_v20 = vld [vmem:[%s1156_s4 + $0x8] sm:$0xff] }
   0xf   :  { %759 = vmatprep.mubr.msk.f32.mxu0 %vm85_vm0, %v31_v13  ;;  %v443_v21 = vld [vmem:[%s1156_s4 + $0x10] sm:$0xff]  ;;  %v444_v22 = vld [vmem:[%s1156_s4 + $0x18] sm:$0xff]  ;;  %v607_v23 = vld [vmem:[%s1157_s5] sm:$0xff] }
  0x10   :  { %52 = vperm.xlu0 %792, %v38_v14   ;;  %47 = vperm.xlu1 %793, %v37_v16   ;;  %v608_v24 = vld [vmem:[%s1157_s5 + $0x8] sm:$0xff]  ;;  %v635_v25 = vld [vmem:[%s1158_s6] sm:$0xff]  ;;  %v609_v26 = vld [vmem:[%s1157_s5 + $0x10] sm:$0xff] }
  0x11   :  { %v636_v27 = vld [vmem:[%s1158_s6 + $0x8] sm:$0xff]  ;;  %v610_v28 = vld [vmem:[%s1157_s5 + $0x18] sm:$0xff]  ;;  %v637_v29 = vld [vmem:[%s1158_s6 + $0x10] sm:$0xff] }
  0x12   :  { %760 = vmatmul.mubr.msk.f32.gmra.mxu0 %vm85_vm0, %v32_v15  ;;  %v638_v30 = vld [vmem:[%s1158_s6 + $0x18] sm:$0xff]  ;;  %v437_v31 = vld [vmem:[%s1155_s3] sm:$0xff] }
  0x13   :  { %762 = vmatprep.mubr.msk.f32.mxu0 %vm85_vm0, %v33_v17  ;;  %781 = vmatprep.mubr.msk.f32.mxu1 %vm465_vm1, %v437_v31 }
  0x14   :  { %447 = vperm.xlu0 %792, %v441_v18   ;;  %452 = vperm.xlu1 %793, %v442_v20  }
  0x16   :  { %763 = vmatmul.mubr.msk.f32.gmra.mxu0 %vm85_vm0, %v34_v19 }
  0x18   :  { %457 = vperm.xlu0 %792, %v443_v21   ;;  %462 = vperm.xlu1 %793, %v444_v22  }
  0x1c   :  { %613 = vperm.xlu0 %792, %v607_v23   ;;  %618 = vperm.xlu1 %793, %v608_v24  }
  0x20   :  { %641 = vperm.xlu0 %792, %v635_v25   ;;  %623 = vperm.xlu1 %793, %v609_v26  }
  0x24   :  { %646 = vperm.xlu0 %792, %v636_v27   ;;  %628 = vperm.xlu1 %793, %v610_v28  }
  0x28   :  { %651 = vperm.xlu0 %792, %v637_v29   ;;  %656 = vperm.xlu1 %793, %v638_v30  }
  0x7d   :  { %v83_v32 = vpop.permute.xlu0 %82 }
  0x7f   :  { %v73_v33 = vpop.permute.xlu1 %72 }
  0x81   :  { %v78_v34 = vpop.permute.xlu0 %77 }
  0x83   :  { %v68_v35 = vpop.permute.xlu1 %67 }
  0x87   :  { %v63_v36 = vpop.permute.xlu0 %62  ;;  %v58_v37 = vpop.permute.xlu1 %57 }
  0x8b   :  { %v53_v38 = vpop.permute.xlu0 %52  ;;  %v48_v41 = vpop.permute.xlu1 %47 }
  0xca   :  { %v755_v39 = vpop.f32.mrf.mxu0 }
  0xcb   :  { %v1000_v40 = vadd.f32 %v755_v39, %v53_v38 }
  0xcc   :  { %v182_v42 = vpop.f32.mrf.mxu0 }
  0xcd   :  { %v1003_v43 = vmul.f32 0.70710677, %v1000_v40  ;;  %v1005_v44 = vadd.f32 %v182_v42, %v48_v41 }
  0xce   :  { %v758_v45 = vpop.f32.mrf.mxu0 }
  0xcf   :  { %v238_v46 = vand.u32 2147483647, %v1003_v43  ;;  %v1009_v47 = vmul.f32 0.70710677, %v1005_v44  ;;  %v1011_v48 = vadd.f32 %v758_v45, %v63_v36  ;;  %vm398_vm8 = vcmp.lt.f32.partialorder %v1003_v43, 0.0 }
  0xd0   :  { %v192_v49 = vpop.f32.mrf.mxu0 }
  0xd1   :  { %v246_v50 = vmul.f32 0.3275911, %v238_v46  ;;  %v1014_v51 = vand.u32 2147483647, %v1009_v47  ;;  %v1017_v52 = vmul.f32 0.70710677, %v1011_v48  ;;  %v1019_v53 = vadd.f32 %v192_v49, %v58_v37 }
  0xd2   :  { %v761_v54 = vpop.f32.mrf.mxu0  ;;  %v350_v26 = vmul.f32 %v238_v46, %v238_v46  ;;  %vm397_vm9 = vcmp.lt.f32.partialorder %v1009_v47, 0.0  ;;  %v221_v47 = vmul.f32 0.5, %v1005_v44  ;;  %v440_v44 = vld [vmem:[%s1155_s3 + $0x18] sm:$0xff] }
  0xd3   :  { %v254_v55 = vadd.f32 1.0, %v246_v50  ;;  %v245_v56 = vmul.f32 0.3275911, %v1014_v51  ;;  %v240_v57 = vand.u32 2147483647, %v1017_v52  ;;  %v1027_v0 = vadd.f32 %v761_v54, %v73_v33 }
  0xd4   :  { %v1024_v58 = vmul.f32 0.70710677, %v1019_v53  ;;  %v202_v59 = vpop.f32.mrf.mxu0  ;;  %v358_v37 = vsub.f32 0.0, %v350_v26  ;;  %vm400_vm2 = vcmp.lt.f32.partialorder %v1017_v52, 0.0 }
  0xd5   :  { %794 = vrcp.f32 %v254_v55  ;;  %v253_v60 = vadd.f32 1.0, %v245_v56  ;;  %v248_v61 = vmul.f32 0.3275911, %v240_v57  ;;  %v1029_v1 = vadd.f32 %v202_v59, %v68_v35 }
  0xd6   :  { %v239_v62 = vand.u32 2147483647, %v1024_v58  ;;  %v764_v63 = vpop.f32.mrf.mxu0  ;;  %v1032_v4 = vmul.f32 0.70710677, %v1027_v0  ;;  %v352_v29 = vmul.f32 %v240_v57, %v240_v57  ;;  %v349_v55 = vmul.f32 %v1014_v51, %v1014_v51 }
  0xd7   :  { %796 = vrcp.f32 %v253_v60  ;;  %v256_v2 = vadd.f32 1.0, %v248_v61  ;;  %v1036_v8 = vmul.f32 0.70710677, %v1029_v1  ;;  %v1038_v9 = vadd.f32 %v764_v63, %v83_v32 }
  0xd8   :  { %v247_v3 = vmul.f32 0.3275911, %v239_v62  ;;  %v212_v6 = vpop.f32.mrf.mxu0  ;;  %v242_v7 = vand.u32 2147483647, %v1032_v4  ;;  %v351_v32 = vmul.f32 %v239_v62, %v239_v62  ;;  %v360_v41 = vsub.f32 0.0, %v352_v29 }
  0xd9   :  { %798 = vrcp.f32 %v256_v2  ;;  %v1040_v11 = vadd.f32 %v212_v6, %v78_v34  ;;  %v241_v12 = vand.u32 2147483647, %v1036_v8  ;;  %v1044_v13 = vmul.f32 0.70710677, %v1038_v9 }
  0xda   :  { %v255_v5 = vadd.f32 1.0, %v247_v3  ;;  %v250_v10 = vmul.f32 0.3275911, %v242_v7  ;;  %v354_v30 = vmul.f32 %v242_v7, %v242_v7  ;;  %v359_v46 = vsub.f32 0.0, %v351_v32 }
  0xdb   :  { %v249_v15 = vmul.f32 0.3275911, %v241_v12  ;;  %v244_v16 = vand.u32 2147483647, %v1044_v13  ;;  %v1048_v17 = vmul.f32 0.70710677, %v1040_v11  ;;  %v353_v35 = vmul.f32 %v241_v12, %v241_v12 }
  0xdc   :  { %800 = vrcp.f32 %v255_v5  ;;  %v258_v14 = vadd.f32 1.0, %v250_v10  ;;  %v362_v42 = vsub.f32 0.0, %v354_v30  ;;  %v367_v60 = vmul.f32 1.442695, %v358_v37 }
  0xdd   :  { %v257_v19 = vadd.f32 1.0, %v249_v15  ;;  %v252_v20 = vmul.f32 0.3275911, %v244_v16  ;;  %v243_v21 = vand.u32 2147483647, %v1048_v17  ;;  %v356_v49 = vmul.f32 %v244_v16, %v244_v16 }
  0xde   :  { %802 = vrcp.f32 %v258_v14  ;;  %v361_v56 = vsub.f32 0.0, %v353_v35  ;;  %v371_v2 = vmul.f32 1.442695, %v360_v41  ;;  %v375_v3 = vmul.f32 1.442695, %v362_v42 }
  0xdf   :  { %804 = vrcp.f32 %v257_v19  ;;  %v260_v22 = vadd.f32 1.0, %v252_v20  ;;  %v251_v25 = vmul.f32 0.3275911, %v243_v21  ;;  %v355_v61 = vmul.f32 %v243_v21, %v243_v21 }
  0xe0   :  { %v369_v7 = vmul.f32 1.442695, %v359_v46  ;;  %v364_v10 = vsub.f32 0.0, %v356_v49  ;;  %v373_v51 = vmul.f32 1.442695, %v361_v56  ;;  %vm402_vm3 = vcmp.lt.f32.partialorder %v1032_v4, 0.0 }
  0xe1   :  { %806 = vrcp.f32 %v260_v22  ;;  %v259_v31 = vadd.f32 1.0, %v251_v25  ;;  %v363_v20 = vsub.f32 0.0, %v355_v61  ;;  %vm404_vm4 = vcmp.lt.f32.partialorder %v1044_v13, 0.0 }
  0xe2   :  { %v1050_v18 = vpop.eup %794  ;;  %v379_v29 = vmul.f32 1.442695, %v364_v10  ;;  %vm401_vm5 = vcmp.lt.f32.partialorder %v1036_v8, 0.0  ;;  %vm403_vm6 = vcmp.lt.f32.partialorder %v1048_v17, 0.0  ;;  %v227_v4 = vmul.f32 0.5, %v1040_v11 }
  0xe3   :  { %v278_v23 = vmul.f32 1.0614054, %v1050_v18  ;;  %808 = vrcp.f32 %v259_v31  ;;  %v377_v37 = vmul.f32 1.442695, %v363_v20  ;;  %vm399_vm7 = vcmp.lt.f32.partialorder %v1024_v58, 0.0 }
  0xe4   :  { %v1054_v24 = vpop.eup %796  ;;  %810 = vpow2.f32 %v367_v60  ;;  %v226_v8 = vmul.f32 0.5, %v1027_v0  ;;  %v225_v11 = vmul.f32 0.5, %v1029_v1  ;;  %v224_v58 = vmul.f32 0.5, %v1011_v48 }
  0xe5   :  { %v277_v27 = vmul.f32 1.0614054, %v1054_v24  ;;  %v286_v34 = vadd.f32 -1.4531521, %v278_v23  ;;  %v357_v23 = vsub.f32 0.0, %v349_v55  ;;  %812 = vpow2.f32 %v375_v3 }
  0xe6   :  { %v1057_v28 = vpop.eup %798  ;;  %814 = vpow2.f32 %v371_v2  ;;  %v222_v1 = vmul.f32 0.5, %v1000_v40  ;;  %v439_v40 = vld [vmem:[%s1155_s3 + $0x10] sm:$0xff] }
  0xe7   :  { %v280_v33 = vmul.f32 1.0614054, %v1057_v28  ;;  %v285_v39 = vadd.f32 -1.4531521, %v277_v27  ;;  %v294_v54 = vmul.f32 %v1050_v18, %v286_v34  ;;  %816 = vpow2.f32 %v369_v7 }
  0xe8   :  { %818 = vpow2.f32 %v373_v51  ;;  %v365_v49 = vmul.f32 1.442695, %v357_v23 }
  0xe9   :  { %v1060_v36 = vpop.eup %800  ;;  %v288_v38 = vadd.f32 -1.4531521, %v280_v33  ;;  %v293_v63 = vmul.f32 %v1054_v24, %v285_v39  ;;  %v302_v12 = vadd.f32 1.4214138, %v294_v54  ;;  %820 = vpow2.f32 %v379_v29 }
  0xea   :  { %v279_v45 = vmul.f32 1.0614054, %v1060_v36  ;;  %822 = vpow2.f32 %v377_v37 }
  0xeb   :  { %v296_v50 = vmul.f32 %v1057_v28, %v288_v38  ;;  %v1067_v59 = vpop.eup %802  ;;  %v301_v22 = vadd.f32 1.4214138, %v293_v63  ;;  %v310_v31 = vmul.f32 %v1050_v18, %v302_v12  ;;  %824 = vpow2.f32 %v365_v49 }
  0xec   :  { %v287_v57 = vadd.f32 -1.4531521, %v279_v45  ;;  %v282_v5 = vmul.f32 1.0614054, %v1067_v59  ;;  %v1072_v14 = vpop.eup %804 }
  0xed   :  { %v304_v62 = vadd.f32 1.4214138, %v296_v50  ;;  %v281_v21 = vmul.f32 1.0614054, %v1072_v14  ;;  %v309_v39 = vmul.f32 %v1054_v24, %v301_v22  ;;  %v318_v54 = vadd.f32 -0.28449672, %v310_v31 }
  0xee   :  { %v295_v6 = vmul.f32 %v1060_v36, %v287_v57  ;;  %v290_v15 = vadd.f32 -1.4531521, %v282_v5  ;;  %v1078_v27 = vpop.eup %806 }
  0xef   :  { %v312_v16 = vmul.f32 %v1057_v28, %v304_v62  ;;  %v289_v30 = vadd.f32 -1.4531521, %v281_v21  ;;  %v284_v32 = vmul.f32 1.0614054, %v1078_v27  ;;  %v317_v62 = vadd.f32 -0.28449672, %v309_v39 }
  0xf0   :  { %v303_v19 = vadd.f32 1.4214138, %v295_v6  ;;  %v298_v25 = vmul.f32 %v1067_v59, %v290_v15  ;;  %v1082_v35 = vpop.eup %808  ;;  %v326_v7 = vmul.f32 %v1050_v18, %v318_v54 }
  0xf1   :  { %v320_v34 = vadd.f32 -0.28449672, %v312_v16  ;;  %v297_v38 = vmul.f32 %v1072_v14, %v289_v30  ;;  %v292_v41 = vadd.f32 -1.4531521, %v284_v32  ;;  %v283_v42 = vmul.f32 1.0614054, %v1082_v35  ;;  %v811_v20 = vpop.eup %810 }
  0xf2   :  { %v311_v26 = vmul.f32 %v1060_v36, %v303_v19  ;;  %v306_v33 = vadd.f32 1.4214138, %v298_v25  ;;  %v325_v19 = vmul.f32 %v1054_v24, %v317_v62  ;;  %v334_v30 = vadd.f32 0.2548296, %v326_v7 }
  0xf3   :  { %v305_v50 = vadd.f32 1.4214138, %v297_v38  ;;  %v300_v55 = vmul.f32 %v1078_v27, %v292_v41  ;;  %v291_v56 = vadd.f32 -1.4531521, %v283_v42  ;;  %v328_v60 = vmul.f32 %v1057_v28, %v320_v34 }
  0xf4   :  { %v314_v45 = vmul.f32 %v1067_v59, %v306_v33  ;;  %v319_v46 = vadd.f32 -0.28449672, %v311_v26  ;;  %v813_v26 = vpop.eup %812  ;;  %v333_v41 = vadd.f32 0.2548296, %v325_v19 }
  0xf5   :  { %v313_v61 = vmul.f32 %v1072_v14, %v305_v50  ;;  %v308_v63 = vadd.f32 1.4214138, %v300_v55  ;;  %v299_v2 = vmul.f32 %v1082_v35, %v291_v56  ;;  %v336_v15 = vadd.f32 0.2548296, %v328_v60  ;;  %v815_v31 = vpop.eup %814 }
  0xf6   :  { %v322_v57 = vadd.f32 -0.28449672, %v314_v45  ;;  %v327_v5 = vmul.f32 %v1060_v36, %v319_v46  ;;  %v817_v38 = vpop.eup %816  ;;  %v342_v50 = vmul.f32 %v1050_v18, %v334_v30 }
  0xf7   :  { %v321_v6 = vadd.f32 -0.28449672, %v313_v61  ;;  %v316_v10 = vmul.f32 %v1078_v27, %v308_v63  ;;  %v307_v12 = vadd.f32 1.4214138, %v299_v2  ;;  %v344_v37 = vmul.f32 %v1057_v28, %v336_v15  ;;  %v819_v42 = vpop.eup %818 }
  0xf8   :  { %v330_v3 = vmul.f32 %v1067_v59, %v322_v57  ;;  %v335_v25 = vadd.f32 0.2548296, %v327_v5  ;;  %v821_v54 = vpop.eup %820  ;;  %v341_v28 = vmul.f32 %v1054_v24, %v333_v41 }
  0xf9   :  { %v329_v16 = vmul.f32 %v1072_v14, %v321_v6  ;;  %v324_v21 = vadd.f32 -0.28449672, %v316_v10  ;;  %v315_v22 = vmul.f32 %v1082_v35, %v307_v12  ;;  %v384_v60 = vmul.f32 %v815_v31, %v344_v37  ;;  %v823_v61 = vpop.eup %822 }
  0xfa   :  { %v338_v51 = vadd.f32 0.2548296, %v330_v3  ;;  %v382_v3 = vmul.f32 %v811_v20, %v342_v50  ;;  %v825_v5 = vpop.eup %824 }
  0xfb   :  { %v337_v29 = vadd.f32 0.2548296, %v329_v16  ;;  %v332_v32 = vmul.f32 %v1078_v27, %v324_v21  ;;  %v323_v33 = vadd.f32 -0.28449672, %v315_v22  ;;  %v392_v18 = vsub.f32 1.0, %v384_v60 }
  0xfc   :  { %v346_v23 = vmul.f32 %v1067_v59, %v338_v51  ;;  %v343_v59 = vmul.f32 %v1060_v36, %v335_v25  ;;  %v381_v10 = vmul.f32 %v825_v5, %v341_v28  ;;  %v390_v24 = vsub.f32 1.0, %v382_v3 }
  0xfd   :  { %v345_v39 = vmul.f32 %v1072_v14, %v337_v29  ;;  %v340_v45 = vadd.f32 0.2548296, %v332_v32  ;;  %v331_v46 = vmul.f32 %v1082_v35, %v323_v33  ;;  %v408_v20 = vsub.f32 0.0, %v392_v18 }
  0xfe   :  { %v386_v34 = vmul.f32 %v813_v26, %v346_v23  ;;  %v383_v2 = vmul.f32 %v817_v38, %v343_v59  ;;  %v228_v21 = vmul.f32 0.5, %v1038_v9  ;;  %v389_v29 = vsub.f32 1.0, %v381_v10 }
  0xff   :  { %v385_v49 = vmul.f32 %v819_v42, %v345_v39  ;;  %v348_v55 = vmul.f32 %v1078_v27, %v340_v45  ;;  %v339_v56 = vadd.f32 0.2548296, %v331_v46  ;;  %v416_v32 = vsel %vm400_vm2, %v408_v20, %v392_v18 }
 0x100   :  { %v394_v57 = vsub.f32 1.0, %v386_v34  ;;  %v391_v15 = vsub.f32 1.0, %v383_v2  ;;  %v406_v33 = vsub.f32 0.0, %v390_v24  ;;  %v405_v37 = vsub.f32 0.0, %v389_v29 }
 0x101   :  { %v388_v14 = vmul.f32 %v821_v54, %v348_v55  ;;  %v347_v62 = vmul.f32 %v1082_v35, %v339_v56  ;;  %v393_v63 = vsub.f32 1.0, %v385_v49  ;;  %v424_v39 = vadd.f32 1.0, %v416_v32  ;;  %v448_v54 = vpop.permute.xlu0 %447  ;;  %v453_v55 = vpop.permute.xlu1 %452 }
 0x102   :  { %v410_v7 = vsub.f32 0.0, %v394_v57  ;;  %v407_v26 = vsub.f32 0.0, %v391_v15  ;;  %v414_v52 = vsel %vm398_vm8, %v406_v33, %v390_v24  ;;  %v413_v42 = vsel %vm397_vm9, %v405_v37, %v389_v29 }
 0x103   :  { %v396_v36 = vsub.f32 1.0, %v388_v14  ;;  %v387_v6 = vmul.f32 %v823_v61, %v347_v62  ;;  %v409_v51 = vsub.f32 0.0, %v393_v63  ;;  %v223_v45 = vmul.f32 0.5, %v1019_v53  ;;  %v438_v53 = vld [vmem:[%s1155_s3 + $0x8] sm:$0xff]  ;;  %s851_s3 = smov [#allocation2]  }
 0x104   :  { %v418_v19 = vsel %vm402_vm3, %v410_v7, %v394_v57  ;;  %v415_v34 = vsel %vm399_vm7, %v407_v26, %v391_v15  ;;  %v432_v43 = vmul.f32 %v424_v39, %v224_v58  ;;  %v422_v46 = vadd.f32 1.0, %v414_v52  ;;  %s702_s2 = sshll.u32 %s851_s3, 4  ;;  %s703_s2 = int_to_ptr.vmem [resolvable:$true] %s702_s2 }
 0x105   :  { %v412_v12 = vsub.f32 0.0, %v396_v36  ;;  %v395_v27 = vsub.f32 1.0, %v387_v6  ;;  %v417_v25 = vsel %vm401_vm5, %v409_v51, %v393_v63  ;;  %v426_v31 = vadd.f32 1.0, %v418_v19  ;;  %v458_v14 = vpop.permute.xlu0 %457  ;;  %v463_v63 = vpop.permute.xlu1 %462  ;;  %s828_s15 = scalar_lea.vmem %s703_s2, 256  ;;  %p833_p1 = scmp.lt.s32.totalorder %s703_s2, %s703_s2 }
 0x106   :  { %v425_v17 = vadd.f32 1.0, %v417_v25  ;;  %v423_v41 = vadd.f32 1.0, %v415_v34  ;;  %v421_v49 = vadd.f32 1.0, %v413_v42  ;;  %v430_v48 = vmul.f32 %v422_v46, %v222_v1  ;;  %p829_p0 = scmp.ne.s32.totalorder %s703_s2, %s828_s15  ;;  %p834_p2 = scmp.lt.s32.totalorder %s828_s15, %s828_s15 }
 0x107   :  { %v420_v35 = vsel %vm404_vm4, %v412_v12, %v396_v36  ;;  %v411_v16 = vsub.f32 0.0, %v395_v27  ;;  %v434_v38 = vmul.f32 %v426_v31, %v226_v8 }
 0x108   :  { %v428_v22 = vadd.f32 1.0, %v420_v35  ;;  %v433_v0 = vmul.f32 %v425_v17, %v225_v11  ;;  %v431_v59 = vmul.f32 %v423_v41, %v223_v45  ;;  %v429_v50 = vmul.f32 %v421_v49, %v221_v47  ;;  %p835_p3 = por %p834_p2, %p833_p1 }
 0x109   :  { %v419_v23 = vsel %vm403_vm6, %v411_v16, %v395_v27  ;;  %v619_v41 = vpop.permute.xlu1 %618 }
 0x10a   :  { %v436_v30 = vmul.f32 %v428_v22, %v228_v21  ;;  %v427_v13 = vadd.f32 1.0, %v419_v23  ;;  %p836_p4 = pnand %p835_p3, %p829_p0 }
 0x10c   :  { %765 = vmatprep.subr.mxu1 %v436_v30  ;;  %v435_v9 = vmul.f32 %v427_v13, %v227_v4 }
 0x10d   :  { %766 = vmatpush3.msra.mxu1 %v436_v30 }
 0x10e   :  { %767 = vmatprep.subr.mxu1 %v435_v9 }
 0x10f   :  { %768 = vmatpush3.msra.mxu1 %v435_v9 }
 0x110   :  { %769 = vmatprep.subr.mxu1 %v434_v38 }
 0x111   :  { %770 = vmatpush3.msra.mxu1 %v434_v38 }
 0x112   :  { %771 = vmatprep.subr.mxu1 %v433_v0 }
 0x113   :  { %772 = vmatpush3.msra.mxu1 %v433_v0  ;;  %v614_v0 = vpop.permute.xlu0 %613 }
 0x114   :  { %773 = vmatprep.subr.mxu1 %v432_v43 }
 0x115   :  { %774 = vmatpush3.msra.mxu1 %v432_v43 }
 0x116   :  { %775 = vmatprep.subr.mxu1 %v431_v59 }
 0x117   :  { %776 = vmatpush3.msra.mxu1 %v431_v59  ;;  %v642_v45 = vpop.permute.xlu0 %641  ;;  %v624_v59 = vpop.permute.xlu1 %623 }
 0x118   :  { %777 = vmatprep.subr.mxu1 %v430_v48 }
 0x119   :  { %778 = vmatpush3.msra.mxu1 %v430_v48 }
 0x11a   :  { %779 = vmatprep.subr.mxu1 %v429_v50 }
 0x11b   :  { %780 = vmatpush3.msra.mxu1 %v429_v50  ;;  %v647_v50 = vpop.permute.xlu0 %646 }
 0x11c   :  { %782 = vmatmul.mubr.msk.f32.vlgmr.msra.gmra.mxu1 %vm465_vm1, %v438_v53 }
 0x11d   :  { %784 = vmatprep.mubr.msk.f32.mxu1 %vm465_vm1, %v439_v40 }
 0x120   :  { %785 = vmatmul.mubr.msk.f32.gmra.mxu1 %vm465_vm1, %v440_v44 }
 0x1dc   :  { %v783_v56 = vpop.f32.mrf.mxu1 }
 0x1dd   :  { %v550_v60 = vadd.f32 %v783_v56, %v453_v55  ;;  %v652_v55 = vpop.permute.xlu0 %651 }
 0x1de   :  { %v544_v57 = vpop.f32.mrf.mxu1 }
 0x1df   :  { %v545_v28 = vadd.f32 %v544_v57, %v448_v54  ;;  %v565_v3 = vsel %vm563_vm10, %v550_v60, 0.0  ;;  %v629_v54 = vpop.permute.xlu1 %628 }
 0x1e0   :  { %v786_v61 = vpop.f32.mrf.mxu1 }
 0x1e1   :  { %v564_v62 = vsel %vm563_vm10, %v545_v28, 0.0  ;;  %v560_v5 = vadd.f32 %v786_v61, %v463_v63 }
 0x1e2   :  { %v554_v2 = vpop.f32.mrf.mxu1  ;;  %v566_v6 = vadd.f32 %v565_v3, %v564_v62 }
 0x1e3   :  { %v555_v36 = vadd.f32 %v554_v2, %v458_v14  ;;  %v569_v10 = vsel %vm563_vm10, %v560_v5, 0.0 }
 0x1e5   :  { %v567_v7 = vsel %vm563_vm10, %v555_v36, 0.0 }
 0x1e6   :  { %v568_v18 = vadd.f32 %v567_v7, %v566_v6 }
 0x1e8   :  { %v570_v12 = vadd.f32 %v569_v10, %v568_v18 }
 0x1ea   :  { %v571_v27 = vrot.slane %v570_v12, 4 }
 0x1ec   :  { %v572_v51 = vadd.f32 %v571_v27, %v570_v12 }
 0x1ee   :  { %v573_v15 = vrot.slane %v572_v51, 2 }
 0x1f0   :  { %v574_v24 = vadd.f32 %v573_v15, %v572_v51 }
 0x1f2   :  { %v575_v35 = vrot.slane %v574_v24, 1 }
 0x1f4   :  { %v576_v16 = vadd.f32 %v575_v35, %v574_v24 }
 0x1f6   :  { %v578_v19 = vmul.f32 0.03125, %v576_v16 }
 0x1f8   :  { %v579_v20 = vsub.f32 %v545_v28, %v578_v19  ;;  %v580_v21 = vsub.f32 %v550_v60, %v578_v19  ;;  %v581_v22 = vsub.f32 %v555_v36, %v578_v19  ;;  %v582_v23 = vsub.f32 %v560_v5, %v578_v19  ;;  %v657_v60 = vpop.permute.xlu1 %656 }
 0x1fa   :  { %v583_v25 = vmul.f32 %v579_v20, %v579_v20  ;;  %v584_v26 = vmul.f32 %v580_v21, %v580_v21  ;;  %v585_v29 = vmul.f32 %v581_v22, %v581_v22  ;;  %v586_v4 = vmul.f32 %v582_v23, %v582_v23 }
 0x1fc   :  { %v587_v30 = vsel %vm563_vm10, %v583_v25, 0.0  ;;  %v588_v13 = vsel %vm563_vm10, %v584_v26, 0.0  ;;  %v590_v32 = vsel %vm563_vm10, %v585_v29, 0.0  ;;  %v592_v8 = vsel %vm563_vm10, %v586_v4, 0.0 }
 0x1fd   :  { %v589_v31 = vadd.f32 %v588_v13, %v587_v30 }
 0x1ff   :  { %v591_v33 = vadd.f32 %v590_v32, %v589_v31 }
 0x201   :  { %v593_v9 = vadd.f32 %v592_v8, %v591_v33 }
 0x203   :  { %v594_v17 = vrot.slane %v593_v9, 4 }
 0x205   :  { %v595_v34 = vadd.f32 %v594_v17, %v593_v9 }
 0x207   :  { %v596_v37 = vrot.slane %v595_v34, 2 }
 0x209   :  { %v597_v11 = vadd.f32 %v596_v37, %v595_v34 }
 0x20b   :  { %v598_v38 = vrot.slane %v597_v11, 1 }
 0x20d   :  { %v599_v39 = vadd.f32 %v598_v38, %v597_v11 }
 0x20f   :  { %v600_v52 = vmul.f32 0.03125, %v599_v39 }
 0x211   :  { %v601_v58 = vadd.f32 1e-05, %v600_v52 }
 0x213   :  { %826 = vrsqrt.f32 %v601_v58 }
 0x220   :  { %v827_v42 = vpop.eup %826 }
 0x221   :  { %v603_v43 = vmul.f32 %v827_v42, %v579_v20  ;;  %v604_v46 = vmul.f32 %v827_v42, %v580_v21  ;;  %v605_v49 = vmul.f32 %v827_v42, %v581_v22  ;;  %v606_v44 = vmul.f32 %v827_v42, %v582_v23 }
 0x223   :  { %v631_v1 = vmul.f32 %v614_v0, %v603_v43  ;;  %v632_v48 = vmul.f32 %v619_v41, %v604_v46  ;;  %v633_v53 = vmul.f32 %v624_v59, %v605_v49  ;;  %v634_v57 = vmul.f32 %v629_v54, %v606_v44 }
 0x225   :  { %v659_v47 = vadd.f32 %v642_v45, %v631_v1  ;;  %v660_v40 = vadd.f32 %v647_v50, %v632_v48  ;;  %v661_v56 = vadd.f32 %v652_v55, %v633_v53  ;;  %v662_v28 = vadd.f32 %v657_v60, %v634_v57 }
 0x227   :  { %663 = vxpose.xlu0.b32.start [1/4] (short) (narrow) %v659_v47, 16 }
 0x22b   :  { %664 = vxpose.xlu0.b32.cont [2/4] (short) (narrow) %v660_v40, 16 }
 0x22f   :  { %665 = vxpose.xlu0.b32.cont [3/4] (short) (narrow) %v661_v56, 16 }
 0x233   :  { %666 = vxpose.xlu0.b32.end [4/4] (short) (narrow) %v662_v28, 16 }
 0x2a3   :  { %v679_v61 = vpop.trf.xlu0 }
 0x2a4   :  { %695 = vst.msk [vmem:[#allocation2] sm:$0xff] %vm85_vm0, %v679_v61 }
 0x2a7   :  { %v680_v14 = vpop.trf.xlu0 }
 0x2a8   :  { %696 = vst.msk [vmem:[#allocation2 + $0x8] sm:$0xff] %vm85_vm0, %v680_v14 }
 0x2a9   :  { %839 = shalt.err (!%p836_p4)
}
 0x2aa   :  { %s852_s16 = smov 128   ;;  %s853_s17 = smov 8  }
 0x2ab   :  { %708 = dma.vmem_to_hbm [thread:$0]  %s703_s2, 256, %s1159_s7, [#allocation3], %s852_s16, %s852_s16, %s853_s17  }
 0x2ac   :  { %848 = dma.done.wait [#allocation3], 256  }
 0x2ad   :  { %849 = vsyncadd [#allocation3], 4294967040 }
 0x2ae   :  { %712 = vsyncpa [#allocation3], 1 }

</bundles_post_ra>
